<compile_context>
chip_gen: v5e
topology: v5e:2x2
jax: 0.10.0
libtpu: 0.0.40
codegen_flags: <defaults>
</compile_context>

<pallas_src>
import jax
import jax.numpy as jnp
from jax.experimental import pallas as pl
from jax.experimental.pallas import tpu as pltpu


# ----------------------------------------------------------------------------
# Kernels
# ----------------------------------------------------------------------------
def gcn_layer1_kernel(a_ref, xw1_ref, b1_ref, w2_ref, o_ref, acc_ref):
    """acc += A_tile @ (X@W1)_tile ; epilogue: relu(acc + b1) @ W2."""
    k = pl.program_id(1)

    @pl.when(k == 0)
    def _():
        acc_ref[...] = jnp.zeros_like(acc_ref)

    # bf16 x bf16 -> f32 accumulate on the MXU (dominant N^2 term).
    acc_ref[...] += jnp.dot(a_ref[...], xw1_ref[...],
                            preferred_element_type=jnp.float32)

    @pl.when(k == pl.num_programs(1) - 1)
    def _():
        h = jnp.maximum(acc_ref[...] + b1_ref[...], 0.0)     # bias + ReLU in f32
        # Dropout(p=0.4) in eval mode -> identity.
        m = jnp.dot(h.astype(jnp.bfloat16), w2_ref[...],     # bf16 MXU projection
                    preferred_element_type=jnp.float32)
        o_ref[...] = m.astype(o_ref.dtype)


def gcn_layer2_kernel(a_ref, m_ref, b2_ref, o_ref, acc_ref):
    """acc += A_tile @ M_tile ; epilogue: +b2 then L2 row-normalize."""
    k = pl.program_id(1)

    @pl.when(k == 0)
    def _():
        acc_ref[...] = jnp.zeros_like(acc_ref)

    acc_ref[...] += jnp.dot(a_ref[...], m_ref[...],
                            preferred_element_type=jnp.float32)

    @pl.when(k == pl.num_programs(1) - 1)
    def _():
        y = acc_ref[...] + b2_ref[...]
        # F.normalize(p=2, dim=-1, eps=1e-12): eps clamps the norm -> clamp ss at 1e-24.
        ss = jnp.sum(y * y, axis=-1, keepdims=True)
        inv = jax.lax.rsqrt(jnp.maximum(ss, 1e-24))           # EUP rsqrt, no divide
        o_ref[...] = (y * inv).astype(o_ref.dtype)


# ----------------------------------------------------------------------------
# Wrapper
# ----------------------------------------------------------------------------
def _round_up(x, m):
    return ((x + m - 1) // m) * m


def _pad2(arr, rows, cols):
    return jnp.pad(arr, ((0, rows - arr.shape[0]), (0, cols - arr.shape[1])))


def _choose_tiles(n, block_m=None, block_k=None):
    """Pick (row tile, reduction tile, padded N). Powers-of-two x 128 only so the
    padded N is a common multiple of both tiles."""
    if block_m is not None and block_k is not None:
        return block_m, block_k, _round_up(n, max(block_m, block_k))
    for bk in (1024, 512, 256, 128):          # wide A tiles: contiguous DMA rows
        for bm in (512, 256, 128):            # large row tiles: less X/M re-stream
            align = max(bm, bk)
            n_pad = _round_up(n, align)
            waste = n_pad - n
            if align > 128 and waste > max(128, n // 8):
                continue                      # don't blow up padded work
            if bm > 128 and n_pad // bm < 2:
                continue                      # keep >= 2 row tiles (megacore)
            return bm, bk, n_pad
    return 128, 128, _round_up(n, 128)


def _vmem_limit_bytes():
    """Gen-gated scoped-VMEM budget: stay <= 48 MiB on 64-MiB-VMEM parts (v7x)."""
    try:
        cap = pltpu.get_tpu_info().vmem_capacity_bytes
    except Exception:
        cap = 64 * 1024 * 1024                # conservative fallback
    if cap <= 64 * 1024 * 1024:
        return 48 * 1024 * 1024
    return 64 * 1024 * 1024


def gcn_forward(a_norm, x, w1, b1, w2, b2, *, block_m=None, block_k=None):
    n = x.shape[0]
    hid = w1.shape[1]
    out_dim = w2.shape[1]

    block_m, block_k, n_pad = _choose_tiles(n, block_m, block_k)
    h_pad = _round_up(hid, 128)
    o_pad = _round_up(out_dim, 128)

    # Precompute XW1 in f32 (tiny matmul), then bf16 for the streamed MXU operand.
    xw1 = x.astype(jnp.float32) @ w1.astype(jnp.float32)

    a_p = _pad2(a_norm.astype(jnp.float32), n_pad, n_pad).astype(jnp.bfloat16)
    xw1_p = _pad2(xw1, n_pad, h_pad).astype(jnp.bfloat16)
    b1_p = _pad2(b1.reshape(1, -1).astype(jnp.float32), 1, h_pad)
    w2_p = _pad2(w2.astype(jnp.float32), h_pad, o_pad).astype(jnp.bfloat16)
    b2_p = _pad2(b2.reshape(1, -1).astype(jnp.float32), 1, o_pad)

    grid = (n_pad // block_m, n_pad // block_k)
    cparams = pltpu.CompilerParams(
        dimension_semantics=("parallel", "arbitrary"),
        vmem_limit_bytes=_vmem_limit_bytes(),
    )

    # ---------------- layer 1 aggregation (+ fused W2 projection) -------------
    flops1 = 2 * n_pad * n_pad * h_pad + 2 * n_pad * h_pad * o_pad
    bytes1 = (a_p.size * 2 + xw1_p.size * 2 * grid[0]
              + b1_p.size * 4 + w2_p.size * 2 + n_pad * o_pad * 2)
    m = pl.pallas_call(
        gcn_layer1_kernel,
        out_shape=jax.ShapeDtypeStruct((n_pad, o_pad), jnp.bfloat16),
        grid_spec=pltpu.PrefetchScalarGridSpec(
            num_scalar_prefetch=0,
            grid=grid,
            in_specs=[
                pl.BlockSpec((block_m, block_k), lambda i, k: (i, k)),  # A tile
                pl.BlockSpec((block_k, h_pad), lambda i, k: (k, 0)),    # X@W1 tile
                pl.BlockSpec((1, h_pad), lambda i, k: (0, 0)),          # b1
                pl.BlockSpec((h_pad, o_pad), lambda i, k: (0, 0)),      # W2
            ],
            out_specs=pl.BlockSpec((block_m, o_pad), lambda i, k: (i, 0)),
            scratch_shapes=[pltpu.VMEM((block_m, h_pad), jnp.float32)],
        ),
        compiler_params=cparams,
        cost_estimate=pl.CostEstimate(flops=flops1, transcendentals=0,
                                      bytes_accessed=bytes1),
    )(a_p, xw1_p, b1_p, w2_p)

    # ---------------- layer 2 aggregation + L2 normalize ----------------------
    flops2 = 2 * n_pad * n_pad * o_pad + 4 * n_pad * o_pad
    bytes2 = (a_p.size * 2 + m.size * 2 * grid[0]
              + b2_p.size * 4 + n_pad * o_pad * 4)
    y = pl.pallas_call(
        gcn_layer2_kernel,
        out_shape=jax.ShapeDtypeStruct((n_pad, o_pad), jnp.float32),
        grid_spec=pltpu.PrefetchScalarGridSpec(
            num_scalar_prefetch=0,
            grid=grid,
            in_specs=[
                pl.BlockSpec((block_m, block_k), lambda i, k: (i, k)),  # A tile
                pl.BlockSpec((block_k, o_pad), lambda i, k: (k, 0)),    # M tile
                pl.BlockSpec((1, o_pad), lambda i, k: (0, 0)),          # b2
            ],
            out_specs=pl.BlockSpec((block_m, o_pad), lambda i, k: (i, 0)),
            scratch_shapes=[pltpu.VMEM((block_m, o_pad), jnp.float32)],
        ),
        compiler_params=cparams,
        cost_estimate=pl.CostEstimate(flops=flops2, transcendentals=n_pad,
                                      bytes_accessed=bytes2),
    )(a_p, m, b2_p)

    return y[:n, :out_dim]


# ----------------------------------------------------------------------------
# Graph glue (plain JAX): dense gcn_norm adjacency
# ----------------------------------------------------------------------------
def build_norm_adj(edge_index, num_nodes):
    """Dense D^-1/2 (A + remaining self loops) D^-1/2, matching GCNConv's gcn_norm."""
    src = edge_index[0]
    dst = edge_index[1]
    a = jnp.zeros((num_nodes, num_nodes), jnp.float32)
    a = a.at[dst, src].add(1.0)                          # duplicate edges summed
    diag = jnp.diagonal(a)
    a = a + jnp.diag(jnp.where(diag == 0.0, 1.0, 0.0))   # add_remaining_self_loops
    deg = jnp.sum(a, axis=1)
    dinv = jnp.where(deg > 0, jax.lax.rsqrt(deg), 0.0)
    return dinv[:, None] * a * dinv[None, :]


def gcn_reference(a, x, w1, b1, w2, b2):
    h = jnp.maximum(a @ (x @ w1) + b1, 0.0)
    y = a @ (h @ w2) + b2
    nrm = jnp.sqrt(jnp.sum(y * y, axis=-1, keepdims=True))
    return y / jnp.maximum(nrm, 1e-12)


# ----------------------------------------------------------------------------
if __name__ == "__main__":
    key = jax.random.PRNGKey(0)

    num_nodes = 300
    input_dim = 8
    hidden_dim = 32
    output_dim = 16
    num_edges = 1200

    k_x, k_e1, k_e2, k_w1, k_w2, k_b1, k_b2 = jax.random.split(key, 7)

    x = jax.random.normal(k_x, (num_nodes, input_dim), dtype=jnp.float32)

    # Random edge_index [2, E] (no explicit self loops; GCNConv adds them).
    src = jax.random.randint(k_e1, (num_edges,), 0, num_nodes)
    dst = (src + 1 + jax.random.randint(k_e2, (num_edges,), 0, num_nodes - 1)) % num_nodes
    edge_index = jnp.stack([src, dst], axis=0)

    # Glorot-style weights; small nonzero biases to exercise the bias paths.
    s1 = (6.0 / (input_dim + hidden_dim)) ** 0.5
    s2 = (6.0 / (hidden_dim + output_dim)) ** 0.5
    w1 = jax.random.uniform(k_w1, (input_dim, hidden_dim), jnp.float32, -s1, s1)
    w2 = jax.random.uniform(k_w2, (hidden_dim, output_dim), jnp.float32, -s2, s2)
    b1 = 0.05 * jax.random.normal(k_b1, (1, hidden_dim), jnp.float32)
    b2 = 0.05 * jax.random.normal(k_b2, (1, output_dim), jnp.float32)

    a_norm = build_norm_adj(edge_index, num_nodes)
    ref = gcn_reference(a_norm, x, w1, b1, w2, b2)

    # Auto-chosen tiles (exercises the multi-K accumulation path at this N).
    out = gcn_forward(a_norm, x, w1, b1, w2, b2)
    out = jax.block_until_ready(out)
    assert out.shape == (num_nodes, output_dim)
    assert bool(jnp.all(jnp.isfinite(out)))
    assert bool(jnp.allclose(jnp.linalg.norm(out, axis=-1), 1.0, atol=1e-4))
    assert bool(jnp.allclose(out, ref, atol=3e-2, rtol=3e-2))

    # Forced large tiles (exercises the decoupled block_m/block_k path).
    out_big = gcn_forward(a_norm, x, w1, b1, w2, b2, block_m=256, block_k=512)
    out_big = jax.block_until_ready(out_big)
    assert bool(jnp.allclose(out_big, ref, atol=3e-2, rtol=3e-2))

    print("KERNEL_OK")
</pallas_src>

<mosaic_0001>
module attributes {stable_mosaic.version = 11 : i64} {
  func.func @gcn_layer1_kernel(%arg0: i32, %arg1: i32, %arg2: memref<128x128xbf16, #tpu.memory_space<vmem>>, %arg3: memref<128x128xbf16, #tpu.memory_space<vmem>>, %arg4: memref<1x128xf32, #tpu.memory_space<vmem>>, %arg5: memref<128x128xbf16, #tpu.memory_space<vmem>>, %arg6: memref<128x128xbf16, #tpu.memory_space<vmem>>, %arg7: memref<128x128xf32, #tpu.memory_space<vmem>>) attributes {dimension_semantics = [#tpu.dimension_semantics<parallel>, #tpu.dimension_semantics<arbitrary>], iteration_bounds = array<i64: 3, 3>, scalar_prefetch = 0 : i64, scratch_operands = 1 : i64, tpu.core_type = #tpu.core_type<tc>, window_params = [{transform_indices = @transform_0, window_bounds = array<i64: 128, 128>}, {transform_indices = @transform_1, window_bounds = array<i64: 128, 128>}, {pipeline_mode = #tpu.pipeline_mode<synchronous>, transform_indices = @transform_2, window_bounds = array<i64: 1, 128>}, {pipeline_mode = #tpu.pipeline_mode<synchronous>, transform_indices = @transform_3, window_bounds = array<i64: 128, 128>}, {transform_indices = @transform_4, window_bounds = array<i64: 128, 128>}]} {
    %c0_i32 = arith.constant 0 : i32
    %0 = arith.cmpi eq, %arg1, %c0_i32 : i32
    %1 = arith.extui %0 : i1 to i32
    %c0_i32_0 = arith.constant 0 : i32
    %2 = arith.cmpi ne, %1, %c0_i32_0 : i32
    scf.if %2 {
      %cst_9 = arith.constant 0.000000e+00 : f32
      %12 = vector.broadcast %cst_9 : f32 to vector<128x128xf32>
      %c0_10 = arith.constant 0 : index
      %c0_11 = arith.constant 0 : index
      %13 = vector.load %arg7[%c0_10, %c0_11] : memref<128x128xf32, #tpu.memory_space<vmem>>, vector<128x128xf32>
      tpu.vector_store %arg7[%c0_10, %c0_11], %12 {strides = array<i32>} : memref<128x128xf32, #tpu.memory_space<vmem>>, vector<128x128xf32>,
    } else {
    }
    %c0 = arith.constant 0 : index
    %c0_1 = arith.constant 0 : index
    %3 = vector.load %arg7[%c0, %c0_1] : memref<128x128xf32, #tpu.memory_space<vmem>>, vector<128x128xf32>
    %c0_2 = arith.constant 0 : index
    %c0_3 = arith.constant 0 : index
    %4 = vector.load %arg2[%c0_2, %c0_3] : memref<128x128xbf16, #tpu.memory_space<vmem>>, vector<128x128xbf16>
    %c0_4 = arith.constant 0 : index
    %c0_5 = arith.constant 0 : index
    %5 = vector.load %arg3[%c0_4, %c0_5] : memref<128x128xbf16, #tpu.memory_space<vmem>>, vector<128x128xbf16>
    %cst = arith.constant dense<0.000000e+00> : vector<128x128xf32>
    %6 = tpu.matmul %4, %5, %cst {dimension_numbers = #tpu.dot_dimension_numbers<[1], [0], [0], [1], [0, 0, 1, 1], [], []>} : vector<128x128xbf16>, vector<128x128xbf16>, vector<128x128xf32> -> vector<128x128xf32>
    %7 = arith.addf %3, %6 : vector<128x128xf32>
    %c0_6 = arith.constant 0 : index
    %c0_7 = arith.constant 0 : index
    %8 = vector.load %arg7[%c0_6, %c0_7] : memref<128x128xf32, #tpu.memory_space<vmem>>, vector<128x128xf32>
    tpu.vector_store %arg7[%c0_6, %c0_7], %7 {strides = array<i32>} : memref<128x128xf32, #tpu.memory_space<vmem>>, vector<128x128xf32>,
    %c2_i32 = arith.constant 2 : i32
    %9 = arith.cmpi eq, %arg1, %c2_i32 : i32
    %10 = arith.extui %9 : i1 to i32
    %c0_i32_8 = arith.constant 0 : i32
    %11 = arith.cmpi ne, %10, %c0_i32_8 : i32
    scf.if %11 {
      %c0_9 = arith.constant 0 : index
      %c0_10 = arith.constant 0 : index
      %12 = vector.load %arg7[%c0_9, %c0_10] : memref<128x128xf32, #tpu.memory_space<vmem>>, vector<128x128xf32>
      %c0_11 = arith.constant 0 : index
      %c0_12 = arith.constant 0 : index
      %13 = vector.load %arg4[%c0_11, %c0_12] : memref<1x128xf32, #tpu.memory_space<vmem>>, vector<1x128xf32>
      %14 = vector.broadcast %13 : vector<1x128xf32> to vector<128x128xf32>
      %15 = arith.addf %12, %14 : vector<128x128xf32>
      %cst_13 = arith.constant 0.000000e+00 : f32
      %16 = vector.broadcast %cst_13 : f32 to vector<128x128xf32>
      %17 = arith.maximumf %15, %16 : vector<128x128xf32>
      %18 = arith.truncf %17 : vector<128x128xf32> to vector<128x128xbf16>
      %c0_14 = arith.constant 0 : index
      %c0_15 = arith.constant 0 : index
      %19 = vector.load %arg5[%c0_14, %c0_15] : memref<128x128xbf16, #tpu.memory_space<vmem>>, vector<128x128xbf16>
      %cst_16 = arith.constant dense<0.000000e+00> : vector<128x128xf32>
      %20 = tpu.matmul %18, %19, %cst_16 {dimension_numbers = #tpu.dot_dimension_numbers<[1], [0], [0], [1], [0, 0, 1, 1], [], []>} : vector<128x128xbf16>, vector<128x128xbf16>, vector<128x128xf32> -> vector<128x128xf32>
      %21 = arith.truncf %20 : vector<128x128xf32> to vector<128x128xbf16>
      %c0_17 = arith.constant 0 : index
      %c0_18 = arith.constant 0 : index
      %22 = vector.load %arg6[%c0_17, %c0_18] : memref<128x128xbf16, #tpu.memory_space<vmem>>, vector<128x128xbf16>
      tpu.vector_store %arg6[%c0_17, %c0_18], %21 {strides = array<i32>} : memref<128x128xbf16, #tpu.memory_space<vmem>>, vector<128x128xbf16>,
    } else {
    }
    return
  }
  func.func @transform_0(%arg0: i32, %arg1: i32) -> (i32, i32) {
    %c0_i32 = arith.constant 0 : i32
    return %arg0, %arg1 : i32, i32
  }
  func.func @transform_1(%arg0: i32, %arg1: i32) -> (i32, i32) {
    %c0_i32 = arith.constant 0 : i32
    %c0_i32_0 = arith.constant 0 : i32
    return %arg1, %c0_i32 : i32, i32
  }
  func.func @transform_2(%arg0: i32, %arg1: i32) -> (i32, i32) {
    %c0_i32 = arith.constant 0 : i32
    %c0_i32_0 = arith.constant 0 : i32
    %c0_i32_1 = arith.constant 0 : i32
    return %c0_i32, %c0_i32_0 : i32, i32
  }
  func.func @transform_3(%arg0: i32, %arg1: i32) -> (i32, i32) {
    %c0_i32 = arith.constant 0 : i32
    %c0_i32_0 = arith.constant 0 : i32
    %c0_i32_1 = arith.constant 0 : i32
    return %c0_i32, %c0_i32_0 : i32, i32
  }
  func.func @transform_4(%arg0: i32, %arg1: i32) -> (i32, i32) {
    %c0_i32 = arith.constant 0 : i32
    %c0_i32_0 = arith.constant 0 : i32
    return %arg0, %c0_i32 : i32, i32
  }
}

</mosaic_0001>

<bundles_post_ra>
// kernel: tpu_custom_call.1
= control target key start
LH: loop header
LB: loop body
LE: loop exit
PB: predicated region body
PF: predicated region fallthrough
CT: control target
= control target key end

     0   :  { %s1876_s0 = inlined_call_operand.hbm [shape: bf16[384,384], index: 0, kind: input, shape index: {}]   ;;  %s1877_s1 = inlined_call_operand.hbm [shape: bf16[384,128], index: 1, kind: input, shape index: {}]   ;;  %s1878_s2 = inlined_call_operand.vmem [shape: f32[1,128], index: 2, kind: input, shape index: {}]   ;;  %s1879_s3 = inlined_call_operand.hbm [shape: bf16[128,128], index: 3, kind: input, shape index: {}]   ;;  %s1880_s4 = inlined_call_operand.hbm [shape: bf16[384,128], index: 4, kind: output, shape index: {}]  }
   0x1   :  { %1895 = sst [smem:[#allocation25_spill]] %s1876_s0 }
   0x2   :  { %1896 = sst [smem:[#allocation26_spill]] %s1878_s2 }
   0x3   :  { %1897 = sst [smem:[#allocation27_spill]] %s1879_s3 }
   0x4   :  { %1898 = sst [smem:[#allocation28_spill]] %s1880_s4 }
   0x5   :  { %9 = vsyncpa [#allocation4], 0 }
   0x6   :  { %11 = vsyncpa [#allocation4 + $0x1], 0 }
   0x7   :  { %12 = vsyncpa [#allocation7], 0 }
   0x8   :  { %14 = vsyncpa [#allocation7 + $0x1], 0 }
   0x9   :  { %15 = vsyncpa [#allocation5], 0 }
   0xa   :  { %17 = vsyncpa [#allocation5 + $0x1], 0  ;;  %s1552_s15 = smov 0   ;;  %s1554_s16 = smov 0  }
   0xb   :  { %s1556_s17 = smov 0   ;;  %s1558_s18 = smov 0  }
   0xc   :  { %s1560_s19 = smov 0   ;;  %s1562_s20 = smov 0  }
   0xd   :  { %s1564_s21 = smov 0   ;;  %s1566_s22 = smov 0  }
   0xe   :  { %s1568_s23 = smov 0   ;;  %s1570_s24 = smov 0  }
   0xf   :  { %s1572_s25 = smov 0   ;;  %s1574_s26 = smov 0  }
  0x10   :  { %s1576_s27 = smov 0   ;;  %s1578_s28 = smov 0  }
  0x11 LB: > { %1899 = sst [smem:[#allocation14_spill]] %s1466_s15  ;;  %s1619_s29 = sadd.s32 4294967295, %s1518_s28   ;;  %s1518_s28 = sphi %s1578_s28, %s23_s28   ;;  %s1514_s27 = sphi %s1576_s27, %s1945_s27   ;;  %s1510_s26 = sphi %s1574_s26, %s1944_s26   ;;  %s1506_s25 = sphi %s1572_s25, %s1943_s25   ;;  %s1502_s24 = sphi %s1570_s24, %s1942_s24   ;;  %s1498_s23 = sphi %s1568_s23, %s1931_s23   ;;  %s1494_s22 = sphi %s1566_s22, %s1941_s22   ;;  %s1490_s21 = sphi %s1564_s21, %s1940_s21   ;;  %s1486_s20 = sphi %s1562_s20, %s1939_s20   ;;  %s1482_s19 = sphi %s1560_s19, %s1938_s19   ;;  %s1478_s18 = sphi %s1558_s18, %s1937_s18   ;;  %s1474_s17 = sphi %s1556_s17, %s1929_s17   ;;  %s1470_s16 = sphi %s1554_s16, %s1936_s16   ;;  %s1466_s15 = sphi %s1552_s15, %s1935_s15  }
  0x12   : > { %1900 = sst [smem:[#allocation15_spill]] %s1474_s17  ;;  %s884_s30 = sadd.s32 4294967294, %s1518_s28  }
  0x13   : > { %1901 = sst [smem:[#allocation16_spill]] %s1498_s23  ;;  %p57_p0 = scmp.ne.s32.totalorder %s1494_s22, %s1490_s21 }
  0x14   : > { %1902 = sst [smem:[#allocation17_spill]] %s1506_s25  ;;  %p58_p1 = scmp.eq.s32.totalorder %s1619_s29, 0 }
  0x15   : > { %1903 = sst [smem:[#allocation18_spill]] %s1514_s27  ;;  %p83_p2 = scmp.ne.s32.totalorder %s1482_s19, %s1478_s18 }
  0x16   : > { %p1628_p3 = por %p58_p1, %p57_p0  ;;  %p148_p4 = scmp.ne.s32.totalorder %s1474_s17, %s1470_s16 }
  0x17   : > { %p1636_p5 = por %p83_p2, %p58_p1  ;;  %p149_p6 = scmp.eq.s32.totalorder %s1619_s29, 8 }
  0x18   : > { %p154_p7 = scmp.ne.s32.totalorder %s1470_s16, %s1466_s15  ;;  %p155_p8 = scmp.eq.s32.totalorder %s884_s30, 8 }
  0x19   : > { %p1643_p9 = por %p149_p6, %p148_p4  ;;  %p885_p10 = scmp.ge.s32.totalorder %s1518_s28, 1 }
  0x1a   : > { %p1648_p11 = por %p155_p8, %p154_p7  ;;  %p162_p12 = scmp.lt.s32.totalorder %s1518_s28, 10 }
  0x1b   : > { %s1906_s8 = scalar_select %p1643_p9, 1, 0 }
  0x1c   : > { %s1908_s9 = scalar_select %p1648_p11, 1, 0 }
  0x1d   : > { %1907 = sst [smem:[#allocation19_spill]] %s1906_s8  ;;  %p1656_p13 = pnand %p885_p10, %p162_p12 }
  0x1e   : > { %1909 = sst [smem:[#allocation20_spill]] %s1908_s9  ;;  %s1520_s14 = smov [#allocation8]  }
  0x1f   : > { %s1910_s3 = sld [smem:[#allocation27_spill]]  ;;  %p1135_p0 = pneg %p1656_p13 }
  0x20   : > { %s178_s18 = sshll.u32 %s1520_s14, 4  ;;  %s1881_s21 = smov 64   ;;  %s179_s18 = int_to_ptr.vmem [resolvable:$true] %s178_s18 }
  0x21   : > { %p1136_p2 = pnand %p1135_p0, %p58_p1  ;;  %s1883_s30 = smov 4  }
  0x22   : > { %s32_s10 = sadd.s32 1, %s1510_s26  ;;  %s35_s11 = sadd.s32 1, %s1514_s27 }
  0x23   : > { %p33_p4 = scmp.ge.s32.totalorder %s32_s10, 3  ;;  %s44_s5 = sadd.s32 1, %s1498_s23 }
  0x24   : > { %p51_p6 = scmp.ne.s32.totalorder %s1498_s23, %s1494_s22  ;;  %p52_p7 = scmp.eq.s32.totalorder %s1518_s28, 0 }
  0x25   : > { %s176_s12 = sshll.u32 %s1910_s3, 4  ;;  %s1947_s10 = smov (%p33_p4, %s32_s10), 0  ;;  %s177_s12 = int_to_ptr.hbm [resolvable:$true] %s176_s12 }
  0x26   : > { %1138 = dma.hbm_to_vmem [thread:$0]  (!%p1136_p2), %s177_s12, 1024, %s179_s18, [#allocation7], %s1881_s21, %s1881_s21, %s1883_s30  }
  0x27   : > { %1912 = sst [smem:[#allocation21_spill]] %s1947_s10  ;;  %s1949_s11 = smov (!%p33_p4, %s35_s11), %s1514_s27 }
  0x28   : > { %s1677_s14 = ssub.s32 %s1510_s26, %s1947_s10  ;;  %p37_p8 = scmp.ge.s32.totalorder %s1949_s11, 3 }
  0x29   : > { %p68_p10 = scmp.eq.s32.totalorder %s1677_s14, 0  ;;  %p1683_p12 = por %p52_p7, %p51_p6 }
  0x2a   : > { %p1151_p0 = scmp.lt.s32.totalorder %s1518_s28, 9  ;;  %s1951_s11 = smov (%p37_p8, %s1949_s11), 0 }
  0x2b   : > { %1914 = sst [smem:[#allocation22_spill]] %s1951_s11  ;;  %s192_s18 = sand.u32 1, %s1498_s23  }
  0x2c   : > { %s1124_s21 = smul.u32 48, %s1514_s27  ;;  %s39_s30 = ssub.s32 %s1514_s27, %s1951_s11 }
  0x2d   : > { %s41_s3 = sor.u32 %s1677_s14, %s39_s30  ;;  %p136_p2 = scmp.eq.s32.totalorder %s39_s30, 0 }
  0x2e   : > { %p42_p4 = scmp.eq.s32.totalorder %s41_s3, 0  ;;  %s888_s10 = sshll.u32 %s192_s18, 6 }
  0x2f   : > { %s1915_s9 = sadd.s32 1, %s1474_s17  ;;  %s201_s8 = sadd.s32 %s1510_s26, %s1124_s21 }
  0x30   : > { %s1698_s15 = scalar_select %p136_p2, %s1474_s17, %s1915_s9  }
  0x31   : > { %s1701_s4 = scalar_select %p42_p4, %s1498_s23, %s44_s5  }
  0x32   : > { %1916 = sst [smem:[#allocation23_spill]] %s1698_s15  ;;  %s891_s25 = sshll.u32 %s201_s8, 2 }
  0x33   : > { %1917 = sst [smem:[#allocation24_spill]] %s1701_s4  ;;  %s196_s11 = scalar_lea.vmem [#allocation3], %s888_s10 }
  0x34   : > { %s206_s30 = sshll.u32 %s196_s11, 4  ;;  %s1918_s0 = sld [smem:[#allocation25_spill]]  ;;  %s207_s30 = int_to_ptr.vmem [resolvable:$true] %s206_s30 }
  0x35   : > { %p1140_p6 = pnand %p1151_p0, %p1683_p12  ;;  %s193_s5 = scalar_lea.sflag [#allocation4], %s192_s18 }
  0x36   : > { %s1523_s4 = smov 192   ;;  %s1919_s23 = smov 4  }
  0x37   : > { %s1920_s21 = smov 64   ;;  %s216_s8 = sand.u32 1, %s1518_s28  }
  0x38   : > { %s70_s10 = sadd.s32 1, %s1486_s20  ;;  %p77_p8 = scmp.ne.s32.totalorder %s1486_s20, %s1482_s19 }
  0x39   : > { %s1720_s11 = scalar_select %p68_p10, %s1486_s20, %s70_s10  }
  0x3a   : > { %s203_s2 = scalar_lea.hbm %s1918_s0, %s891_s25  ;;  %p79_p2 = por %p77_p8, %p52_p7 }
  0x3b   : > { %s204_s9 = sshll.u32 %s203_s2, 4  ;;  %s218_s25 = sand.u32 1, %s1486_s20   ;;  %s205_s9 = int_to_ptr.hbm [resolvable:$true] %s204_s9 }
  0x3c   : > { %1142 = dma.hbm_to_vmem [thread:$0]  (!%p1140_p6), %s205_s9, 1024, %s207_s30, %s193_s5, %s1523_s4, %s1920_s21, %s1919_s23  }
  0x3d   : > { %s1003_s2 = sshll.u32 %s1510_s26, 6  ;;  %s892_s27 = sshll.u32 %s218_s25, 6 }
  0x3e   : > { %s225_s18 = scalar_lea.hbm %s1877_s1, %s1003_s2  ;;  %s220_s15 = scalar_lea.vmem [#allocation6], %s892_s27 }
  0x3f   : > { %s226_s0 = sshll.u32 %s225_s18, 4  ;;  %s228_s17 = sshll.u32 %s220_s15, 4  ;;  %s227_s0 = int_to_ptr.hbm [resolvable:$true] %s226_s0  ;;  %s229_s17 = int_to_ptr.vmem [resolvable:$true] %s228_s17 }
  0x40   : > { %p1143_p12 = pnand %p1151_p0, %p79_p2  ;;  %s217_s4 = scalar_lea.sflag [#allocation7], %s216_s8 }
  0x41   : > { %240 = sbr.rel (%p1656_p13) target bundleno = 509 (0x1fd), region = 36  ;;  %s242_s14 = sand.u32 (!%p1656_p13), 1, %s1494_s22  }
  0x42   : > { %1145 = dma.hbm_to_vmem [thread:$0]  (!%p1143_p12), %s227_s0, 1024, %s229_s17, %s217_s4, %s1920_s21, %s1920_s21, %s1919_s23  }
  0x43   : > { %s896_s30 = sshll.u32 (!%p1656_p13), %s242_s14, 6  ;;  %s243_s9 = scalar_lea.sflag (!%p1656_p13), [#allocation4], %s242_s14 }
  0x44   : > { %s1737_s5 = scalar_lea.vmem (!%p1656_p13), [#allocation3], %s896_s30 }
  0x46   : > { %1449 = dma.done.wait (%p1628_p3), %s243_s9, 1024  }
  0x47   : > { %1451 = vsyncadd (%p1628_p3), %s243_s9, 4294966272  ;;  %s252_s15 = sand.u32 1, %s1619_s29   ;;  %s254_s0 = sand.u32 1, %s1482_s19  }
  0x48   : > { %s897_s17 = sshll.u32 %s254_s0, 6  ;;  %s253_s23 = scalar_lea.sflag [#allocation7], %s252_s15 }
  0x49   : > { %s1745_s13 = scalar_lea.vmem [#allocation6], %s897_s17 }
  0x4a   : > { %1453 = dma.done.wait (%p1636_p5), %s253_s23, 1024  }
  0x4b   : > { %1455 = vsyncadd (%p1636_p5), %s253_s23, 4294966272 }
  0x4c   : > { %1457 = dma.done.wait (%p58_p1), [#allocation7], 1024  }
  0x4d   : > { %1459 = vsyncadd (%p58_p1), [#allocation7], 4294966272  ;;  %s289_s6 = sand.u32 1, %s1470_s16   ;;  %p900_p3 = scmp.ne.s32.totalorder %s1502_s24, 0 }
  0x4e   : > { %s899_s21 = sshll.u32 %s289_s6, 6 }
  0x4f   : > { %s1758_s8 = scalar_lea.vmem [#allocation9], %s899_s21  ;;  %298 = sbr.rel (%p900_p3) target bundleno = 101 (0x65), region = 52 }
  0x54   : > { %v1524_v0 = vmov 0.0  }
  0x55   : > { %299 = vst [vmem:[#allocation2 + $0x30] sm:$0xff] %v1524_v0 }
  0x56   : > { %300 = vst [vmem:[#allocation2] sm:$0xff] %v1524_v0 }
  0x57   : > { %301 = vst [vmem:[#allocation2 + $0x58] sm:$0xff] %v1524_v0 }
  0x58   : > { %302 = vst [vmem:[#allocation2 + $0x18] sm:$0xff] %v1524_v0 }
  0x59   : > { %303 = vst [vmem:[#allocation2 + $0x50] sm:$0xff] %v1524_v0 }
  0x5a   : > { %304 = vst [vmem:[#allocation2 + $0x68] sm:$0xff] %v1524_v0 }
  0x5b   : > { %305 = vst [vmem:[#allocation2 + $0x8] sm:$0xff] %v1524_v0 }
  0x5c   : > { %306 = vst [vmem:[#allocation2 + $0x48] sm:$0xff] %v1524_v0 }
  0x5d   : > { %307 = vst [vmem:[#allocation2 + $0x40] sm:$0xff] %v1524_v0 }
  0x5e   : > { %308 = vst [vmem:[#allocation2 + $0x20] sm:$0xff] %v1524_v0 }
  0x5f   : > { %309 = vst [vmem:[#allocation2 + $0x10] sm:$0xff] %v1524_v0 }
  0x60   : > { %310 = vst [vmem:[#allocation2 + $0x38] sm:$0xff] %v1524_v0 }
  0x61   : > { %311 = vst [vmem:[#allocation2 + $0x60] sm:$0xff] %v1524_v0 }
  0x62   : > { %312 = vst [vmem:[#allocation2 + $0x70] sm:$0xff] %v1524_v0 }
  0x63   : > { %313 = vst [vmem:[#allocation2 + $0x78] sm:$0xff] %v1524_v0 }
  0x64   : > { %314 = vst [vmem:[#allocation2 + $0x28] sm:$0xff] %v1524_v0 }
  0x65 PF: > { %v1019_v1 = vld [vmem:[%s1745_s13 + $0x38] sm:$0xff]  ;;  %v1018_v2 = vld [vmem:[%s1745_s13 + $0x30] sm:$0xff]  ;;  %v1017_v3 = vld [vmem:[%s1745_s13 + $0x28] sm:$0xff]  ;;  %p965_p1 = scmp.ne.s32.totalorder %s1502_s24, 2 }
  0x66   : > { %459 = vmatpush.bf16.msra.mxu0 %v1019_v1  ;;  %1076 = vmatpush.bf16.msra.mxu1 %v1019_v1  ;;  %v1016_v4 = vld [vmem:[%s1745_s13 + $0x20] sm:$0xff]  ;;  %v1015_v5 = vld [vmem:[%s1745_s13 + $0x18] sm:$0xff]  ;;  %v1014_v6 = vld [vmem:[%s1745_s13 + $0x10] sm:$0xff]  ;;  %s1921_s7 = sld [smem:[#allocation26_spill]] (!%p965_p1) }
  0x67   : > { %1077 = vmatpush.bf16.msra.mxu2 %v1019_v1  ;;  %1078 = vmatpush.bf16.msra.mxu3 %v1019_v1  ;;  %v1013_v7 = vld [vmem:[%s1745_s13 + $0x8] sm:$0xff]  ;;  %v1012_v8 = vld [vmem:[%s1745_s13] sm:$0xff]  ;;  %v1006_v10 = vld [vmem:[%s1737_s5 + $0x10] sm:$0xff] }
  0x68   : > { %v1004_v9 = vld [vmem:[%s1737_s5] sm:$0xff]  ;;  %v1010_v12 = vld [vmem:[%s1737_s5 + $0x30] sm:$0xff]  ;;  %v1005_v13 = vld [vmem:[%s1737_s5 + $0x8] sm:$0xff] }
  0x69   : > { %v1008_v11 = vld [vmem:[%s1737_s5 + $0x20] sm:$0xff]  ;;  %v1007_v14 = vld [vmem:[%s1737_s5 + $0x18] sm:$0xff]  ;;  %v1009_v15 = vld [vmem:[%s1737_s5 + $0x28] sm:$0xff] }
  0x6a   : > { %460 = vmatpush.bf16.msra.mxu0 %v1018_v2  ;;  %1079 = vmatpush.bf16.msra.mxu1 %v1018_v2  ;;  %v1011_v16 = vld [vmem:[%s1737_s5 + $0x38] sm:$0xff]  ;;  %v315_v17 = vld [vmem:[#allocation2 + $0x30] sm:$0xff]  ;;  %v323_v23 = vld [vmem:[#allocation2 + $0x40] sm:$0xff] }
  0x6b   : > { %1080 = vmatpush.bf16.msra.mxu2 %v1018_v2  ;;  %1081 = vmatpush.bf16.msra.mxu3 %v1018_v2  ;;  %v319_v18 = vld [vmem:[#allocation2 + $0x50] sm:$0xff]  ;;  %v327_v24 = vld [vmem:[#allocation2 + $0x60] sm:$0xff]  ;;  %v320_v26 = vld [vmem:[#allocation2 + $0x68] sm:$0xff] }
  0x6c   : > { %v316_v25 = vld [vmem:[#allocation2] sm:$0xff]  ;;  %v328_v36 = vld [vmem:[#allocation2 + $0x70] sm:$0xff]  ;;  %v317_v37 = vld [vmem:[#allocation2 + $0x58] sm:$0xff] }
  0x6d   : > { %v324_v35 = vld [vmem:[#allocation2 + $0x20] sm:$0xff]  ;;  %v321_v38 = vld [vmem:[#allocation2 + $0x8] sm:$0xff]  ;;  %v325_v47 = vld [vmem:[#allocation2 + $0x10] sm:$0xff] }
  0x6e   : > { %461 = vmatpush.bf16.msra.mxu0 %v1017_v3  ;;  %1082 = vmatpush.bf16.msra.mxu1 %v1017_v3  ;;  %v329_v48 = vld [vmem:[#allocation2 + $0x78] sm:$0xff]  ;;  %v322_v50 = vld [vmem:[#allocation2 + $0x48] sm:$0xff] }
  0x6f   : > { %1083 = vmatpush.bf16.msra.mxu2 %v1017_v3  ;;  %1084 = vmatpush.bf16.msra.mxu3 %v1017_v3  ;;  %v318_v49 = vld [vmem:[#allocation2 + $0x18] sm:$0xff]  ;;  %v330_v60 = vld [vmem:[#allocation2 + $0x28] sm:$0xff] }
  0x70   : > { %v326_v59 = vld [vmem:[#allocation2 + $0x38] sm:$0xff] }
  0x72   : > { %462 = vmatpush.bf16.msra.mxu0 %v1016_v4  ;;  %1085 = vmatpush.bf16.msra.mxu1 %v1016_v4 }
  0x73   : > { %1086 = vmatpush.bf16.msra.mxu2 %v1016_v4  ;;  %1087 = vmatpush.bf16.msra.mxu3 %v1016_v4 }
  0x76   : > { %463 = vmatpush.bf16.msra.mxu0 %v1015_v5  ;;  %1088 = vmatpush.bf16.msra.mxu1 %v1015_v5 }
  0x77   : > { %1089 = vmatpush.bf16.msra.mxu2 %v1015_v5  ;;  %1090 = vmatpush.bf16.msra.mxu3 %v1015_v5 }
  0x7a   : > { %464 = vmatpush.bf16.msra.mxu0 %v1014_v6  ;;  %1091 = vmatpush.bf16.msra.mxu1 %v1014_v6 }
  0x7b   : > { %1092 = vmatpush.bf16.msra.mxu2 %v1014_v6  ;;  %1093 = vmatpush.bf16.msra.mxu3 %v1014_v6 }
  0x7e   : > { %465 = vmatpush.bf16.msra.mxu0 %v1013_v7  ;;  %1094 = vmatpush.bf16.msra.mxu1 %v1013_v7 }
  0x7f   : > { %1095 = vmatpush.bf16.msra.mxu2 %v1013_v7  ;;  %1096 = vmatpush.bf16.msra.mxu3 %v1013_v7 }
  0x82   : > { %466 = vmatpush.bf16.msra.mxu0 %v1012_v8  ;;  %1097 = vmatpush.bf16.msra.mxu1 %v1012_v8 }
  0x83   : > { %1098 = vmatpush.bf16.msra.mxu2 %v1012_v8  ;;  %1099 = vmatpush.bf16.msra.mxu3 %v1012_v8 }
  0x85   : > { %467 = vmatmul.bf16.vlgmr.msra.gmra.mxu0 %v1004_v9  ;;  %477 = vmatmul.bf16.vlgmr.msra.gmra.mxu1 %v1006_v10 }
  0x86   : > { %487 = vmatmul.bf16.vlgmr.msra.gmra.mxu2 %v1008_v11  ;;  %497 = vmatmul.bf16.vlgmr.msra.gmra.mxu3 %v1010_v12 }
  0x95   : > { %472 = vmatmul.bf16.gmra.mxu0 %v1005_v13  ;;  %482 = vmatmul.bf16.gmra.mxu1 %v1007_v14 }
  0x96   : > { %492 = vmatmul.bf16.gmra.mxu2 %v1009_v15  ;;  %502 = vmatmul.bf16.gmra.mxu3 %v1011_v16 }
 0x102   : > { %v468_v19 = vpop.f32.mrf.mxu0  ;;  %v478_v20 = vpop.f32.mrf.mxu1 }
 0x103   : > { %v508_v21 = vadd.f32 %v468_v19, %v315_v17  ;;  %v512_v22 = vadd.f32 %v478_v20, %v319_v18 }
 0x105   : > { %524 = vst [vmem:[#allocation2 + $0x30] sm:$0xff] %v508_v21 }
 0x106   : > { %528 = vst [vmem:[#allocation2 + $0x50] sm:$0xff] %v512_v22 }
 0x109   : > { %v488_v27 = vpop.f32.mrf.mxu2  ;;  %v498_v28 = vpop.f32.mrf.mxu3 }
 0x10a   : > { %v516_v29 = vadd.f32 %v488_v27, %v323_v23  ;;  %v520_v30 = vadd.f32 %v498_v28, %v327_v24  ;;  %v470_v31 = vpop.f32.mrf.mxu0  ;;  %v480_v32 = vpop.f32.mrf.mxu1 }
 0x10b   : > { %v509_v33 = vadd.f32 %v470_v31, %v316_v25  ;;  %v513_v34 = vadd.f32 %v480_v32, %v320_v26 }
 0x10c   : > { %532 = vst [vmem:[#allocation2 + $0x40] sm:$0xff] %v516_v29 }
 0x10d   : > { %536 = vst [vmem:[#allocation2 + $0x60] sm:$0xff] %v520_v30 }
 0x10e   : > { %525 = vst [vmem:[#allocation2] sm:$0xff] %v509_v33 }
 0x10f   : > { %529 = vst [vmem:[#allocation2 + $0x68] sm:$0xff] %v513_v34 }
 0x111   : > { %v490_v39 = vpop.f32.mrf.mxu2  ;;  %v500_v40 = vpop.f32.mrf.mxu3 }
 0x112   : > { %v517_v41 = vadd.f32 %v490_v39, %v324_v35  ;;  %v521_v42 = vadd.f32 %v500_v40, %v328_v36  ;;  %v473_v43 = vpop.f32.mrf.mxu0  ;;  %v483_v44 = vpop.f32.mrf.mxu1 }
 0x113   : > { %v510_v45 = vadd.f32 %v473_v43, %v317_v37  ;;  %v514_v46 = vadd.f32 %v483_v44, %v321_v38 }
 0x114   : > { %533 = vst [vmem:[#allocation2 + $0x20] sm:$0xff] %v517_v41 }
 0x115   : > { %537 = vst [vmem:[#allocation2 + $0x70] sm:$0xff] %v521_v42 }
 0x116   : > { %526 = vst [vmem:[#allocation2 + $0x58] sm:$0xff] %v510_v45 }
 0x117   : > { %530 = vst [vmem:[#allocation2 + $0x8] sm:$0xff] %v514_v46 }
 0x119   : > { %v493_v51 = vpop.f32.mrf.mxu2  ;;  %v503_v52 = vpop.f32.mrf.mxu3 }
 0x11a   : > { %v518_v53 = vadd.f32 %v493_v51, %v325_v47  ;;  %v522_v54 = vadd.f32 %v503_v52, %v329_v48  ;;  %v475_v55 = vpop.f32.mrf.mxu0  ;;  %v485_v56 = vpop.f32.mrf.mxu1 }
 0x11b   : > { %v511_v57 = vadd.f32 %v475_v55, %v318_v49  ;;  %v515_v58 = vadd.f32 %v485_v56, %v322_v50 }
 0x11c   : > { %534 = vst [vmem:[#allocation2 + $0x10] sm:$0xff] %v518_v53 }
 0x11d   : > { %538 = vst [vmem:[#allocation2 + $0x78] sm:$0xff] %v522_v54 }
 0x11e   : > { %527 = vst [vmem:[#allocation2 + $0x18] sm:$0xff] %v511_v57 }
 0x11f   : > { %531 = vst [vmem:[#allocation2 + $0x48] sm:$0xff] %v515_v58 }
 0x121   : > { %v495_v61 = vpop.f32.mrf.mxu2  ;;  %v505_v62 = vpop.f32.mrf.mxu3  ;;  %543 = sbr.rel (%p965_p1) target bundleno = 487 (0x1e7), region = 56 }
 0x122   : > { %v519_v63 = vadd.f32 %v495_v61, %v326_v59  ;;  %v523_v0 = vadd.f32 %v505_v62, %v330_v60 }
 0x124   : > { %535 = vst [vmem:[#allocation2 + $0x38] sm:$0xff] %v519_v63 }
 0x125   : > { %539 = vst [vmem:[#allocation2 + $0x28] sm:$0xff] %v523_v0 }
 0x126   : > { %v1027_v1 = vld [vmem:[#allocation8 + $0x38] sm:$0xff]  ;;  %v1026_v2 = vld [vmem:[#allocation8 + $0x30] sm:$0xff]  ;;  %v1025_v3 = vld [vmem:[#allocation8 + $0x28] sm:$0xff] }
 0x127   : > { %668 = vmatpush.bf16.msra.mxu0 %v1027_v1  ;;  %1100 = vmatpush.bf16.msra.mxu1 %v1027_v1  ;;  %v1024_v4 = vld [vmem:[#allocation8 + $0x20] sm:$0xff]  ;;  %v1023_v5 = vld [vmem:[#allocation8 + $0x18] sm:$0xff]  ;;  %v1022_v7 = vld [vmem:[#allocation8 + $0x10] sm:$0xff] }
 0x128   : > { %1101 = vmatpush.bf16.msra.mxu2 %v1027_v1  ;;  %1102 = vmatpush.bf16.msra.mxu3 %v1027_v1  ;;  %v1781_v6 = vld [vmem:[%s1921_s7] ss:$0 sm:$0xff]  ;;  %v544_v8 = vld [vmem:[#allocation2 + $0x30] sm:$0xff]  ;;  %v549_v11 = vld [vmem:[#allocation2 + $0x68] sm:$0xff] }
 0x129   : > { %v545_v9 = vld [vmem:[#allocation2] sm:$0xff]  ;;  %v548_v10 = vld [vmem:[#allocation2 + $0x50] sm:$0xff]  ;;  %v564_v16 = vadd.f32 %v1781_v6, %v544_v8  ;;  %v569_v19 = vadd.f32 %v1781_v6, %v549_v11  ;;  %v1021_v21 = vld [vmem:[#allocation8 + $0x8] sm:$0xff] }
 0x12a   : > { %v552_v12 = vld [vmem:[#allocation2 + $0x40] sm:$0xff]  ;;  %v557_v15 = vld [vmem:[#allocation2 + $0x70] sm:$0xff]  ;;  %v565_v17 = vadd.f32 %v1781_v6, %v545_v9  ;;  %v568_v18 = vadd.f32 %v1781_v6, %v548_v10  ;;  %v546_v38 = vld [vmem:[#allocation2 + $0x58] sm:$0xff] }
 0x12b   : > { %669 = vmatpush.bf16.msra.mxu0 %v1026_v2  ;;  %1103 = vmatpush.bf16.msra.mxu1 %v1026_v2  ;;  %v553_v13 = vld [vmem:[#allocation2 + $0x20] sm:$0xff]  ;;  %v572_v20 = vadd.f32 %v1781_v6, %v552_v12  ;;  %v577_v24 = vadd.f32 %v1781_v6, %v557_v15  ;;  %v580_v25 = vmax.f32 %v564_v16, 0.0  ;;  %v585_v28 = vmax.f32 %v569_v19, 0.0  ;;  %v547_v39 = vld [vmem:[#allocation2 + $0x18] sm:$0xff]  ;;  %v550_v40 = vld [vmem:[#allocation2 + $0x8] sm:$0xff] }
 0x12c   : > { %1104 = vmatpush.bf16.msra.mxu2 %v1026_v2  ;;  %1105 = vmatpush.bf16.msra.mxu3 %v1026_v2  ;;  %v556_v14 = vld [vmem:[#allocation2 + $0x60] sm:$0xff]  ;;  %v573_v22 = vadd.f32 %v1781_v6, %v553_v13  ;;  %v581_v26 = vmax.f32 %v565_v17, 0.0  ;;  %v584_v27 = vmax.f32 %v568_v18, 0.0  ;;  %v551_v41 = vld [vmem:[#allocation2 + $0x48] sm:$0xff]  ;;  %v554_v42 = vld [vmem:[#allocation2 + $0x10] sm:$0xff]  ;;  %v566_v46 = vadd.f32 %v1781_v6, %v546_v38 }
 0x12d   : > { %v576_v23 = vadd.f32 %v1781_v6, %v556_v14  ;;  %v1020_v29 = vld [vmem:[#allocation8] sm:$0xff]  ;;  %v588_v30 = vmax.f32 %v572_v20, 0.0  ;;  %v593_v33 = vmax.f32 %v577_v24, 0.0  ;;  %v555_v43 = vld [vmem:[#allocation2 + $0x38] sm:$0xff]  ;;  %v559_v45 = vld [vmem:[#allocation2 + $0x28] sm:$0xff]  ;;  %v567_v47 = vadd.f32 %v1781_v6, %v547_v39 }
 0x12e   : > { %v589_v31 = vmax.f32 %v573_v22, 0.0  ;;  %v596_v34 = vpack.c.bf16 %v581_v26, %v580_v25  ;;  %v598_v35 = vpack.c.bf16 %v585_v28, %v584_v27  ;;  %v558_v44 = vld [vmem:[#allocation2 + $0x78] sm:$0xff]  ;;  %v570_v48 = vadd.f32 %v1781_v6, %v550_v40 }
 0x12f   : > { %670 = vmatpush.bf16.msra.mxu0 %v1025_v3  ;;  %1106 = vmatpush.bf16.msra.mxu1 %v1025_v3  ;;  %v592_v32 = vmax.f32 %v576_v23, 0.0  ;;  %v571_v49 = vadd.f32 %v1781_v6, %v551_v41  ;;  %v574_v50 = vadd.f32 %v1781_v6, %v554_v42  ;;  %v575_v51 = vadd.f32 %v1781_v6, %v555_v43 }
 0x130   : > { %1107 = vmatpush.bf16.msra.mxu2 %v1025_v3  ;;  %1108 = vmatpush.bf16.msra.mxu3 %v1025_v3  ;;  %v600_v36 = vpack.c.bf16 %v589_v31, %v588_v30  ;;  %v578_v52 = vadd.f32 %v1781_v6, %v558_v44  ;;  %v579_v53 = vadd.f32 %v1781_v6, %v559_v45  ;;  %v582_v54 = vmax.f32 %v566_v46, 0.0 }
 0x131   : > { %v602_v37 = vpack.c.bf16 %v593_v33, %v592_v32  ;;  %v583_v55 = vmax.f32 %v567_v47, 0.0  ;;  %v586_v56 = vmax.f32 %v570_v48, 0.0  ;;  %v587_v57 = vmax.f32 %v571_v49, 0.0 }
 0x132   : > { %v590_v58 = vmax.f32 %v574_v50, 0.0  ;;  %v591_v59 = vmax.f32 %v575_v51, 0.0  ;;  %v594_v60 = vmax.f32 %v578_v52, 0.0  ;;  %v595_v61 = vmax.f32 %v579_v53, 0.0 }
 0x133   : > { %671 = vmatpush.bf16.msra.mxu0 %v1024_v4  ;;  %1109 = vmatpush.bf16.msra.mxu1 %v1024_v4  ;;  %v597_v62 = vpack.c.bf16 %v583_v55, %v582_v54  ;;  %v599_v63 = vpack.c.bf16 %v587_v57, %v586_v56 }
 0x134   : > { %1110 = vmatpush.bf16.msra.mxu2 %v1024_v4  ;;  %1111 = vmatpush.bf16.msra.mxu3 %v1024_v4  ;;  %v601_v0 = vpack.c.bf16 %v591_v59, %v590_v58  ;;  %v603_v1 = vpack.c.bf16 %v595_v61, %v594_v60 }
 0x137   : > { %672 = vmatpush.bf16.msra.mxu0 %v1023_v5  ;;  %1112 = vmatpush.bf16.msra.mxu1 %v1023_v5 }
 0x138   : > { %1113 = vmatpush.bf16.msra.mxu2 %v1023_v5  ;;  %1114 = vmatpush.bf16.msra.mxu3 %v1023_v5 }
 0x13b   : > { %673 = vmatpush.bf16.msra.mxu0 %v1022_v7  ;;  %1115 = vmatpush.bf16.msra.mxu1 %v1022_v7 }
 0x13c   : > { %1116 = vmatpush.bf16.msra.mxu2 %v1022_v7  ;;  %1117 = vmatpush.bf16.msra.mxu3 %v1022_v7 }
 0x13f   : > { %674 = vmatpush.bf16.msra.mxu0 %v1021_v21  ;;  %1118 = vmatpush.bf16.msra.mxu1 %v1021_v21 }
 0x140   : > { %1119 = vmatpush.bf16.msra.mxu2 %v1021_v21  ;;  %1120 = vmatpush.bf16.msra.mxu3 %v1021_v21 }
 0x143   : > { %675 = vmatpush.bf16.msra.mxu0 %v1020_v29  ;;  %1121 = vmatpush.bf16.msra.mxu1 %v1020_v29 }
 0x144   : > { %1122 = vmatpush.bf16.msra.mxu2 %v1020_v29  ;;  %1123 = vmatpush.bf16.msra.mxu3 %v1020_v29 }
 0x146   : > { %676 = vmatmul.bf16.vlgmr.msra.gmra.mxu0 %v596_v34  ;;  %686 = vmatmul.bf16.vlgmr.msra.gmra.mxu1 %v598_v35 }
 0x147   : > { %696 = vmatmul.bf16.vlgmr.msra.gmra.mxu2 %v600_v36  ;;  %706 = vmatmul.bf16.vlgmr.msra.gmra.mxu3 %v602_v37 }
 0x156   : > { %681 = vmatmul.bf16.gmra.mxu0 %v597_v62  ;;  %691 = vmatmul.bf16.gmra.mxu1 %v599_v63 }
 0x157   : > { %701 = vmatmul.bf16.gmra.mxu2 %v601_v0  ;;  %711 = vmatmul.bf16.gmra.mxu3 %v603_v1 }
 0x1c3   : > { %v677_v2 = vpop.f32.mrf.mxu0  ;;  %v687_v3 = vpop.f32.mrf.mxu1 }
 0x1ca   : > { %v697_v4 = vpop.f32.mrf.mxu2  ;;  %v707_v5 = vpop.f32.mrf.mxu3 }
 0x1cb   : > { %v679_v6 = vpop.f32.mrf.mxu0  ;;  %v689_v7 = vpop.f32.mrf.mxu1 }
 0x1cc   : > { %v1032_v8 = vpack.c.bf16 %v679_v6, %v677_v2  ;;  %v1042_v9 = vpack.c.bf16 %v689_v7, %v687_v3 }
 0x1ce   : > { %1033 = vst [vmem:[%s1758_s8] sm:$0xff] %v1032_v8  }
 0x1cf   : > { %1070 = vst [vmem:[%s1758_s8 + $0x10] sm:$0xff] %v1042_v9  }
 0x1d2   : > { %v699_v10 = vpop.f32.mrf.mxu2  ;;  %v709_v11 = vpop.f32.mrf.mxu3 }
 0x1d3   : > { %v1052_v12 = vpack.c.bf16 %v699_v10, %v697_v4  ;;  %v1062_v13 = vpack.c.bf16 %v709_v11, %v707_v5  ;;  %v682_v14 = vpop.f32.mrf.mxu0  ;;  %v692_v15 = vpop.f32.mrf.mxu1 }
 0x1d5   : > { %1072 = vst [vmem:[%s1758_s8 + $0x20] sm:$0xff] %v1052_v12  }
 0x1d6   : > { %1074 = vst [vmem:[%s1758_s8 + $0x30] sm:$0xff] %v1062_v13  }
 0x1da   : > { %v702_v16 = vpop.f32.mrf.mxu2  ;;  %v712_v17 = vpop.f32.mrf.mxu3 }
 0x1db   : > { %v684_v18 = vpop.f32.mrf.mxu0  ;;  %v694_v19 = vpop.f32.mrf.mxu1 }
 0x1dc   : > { %v1037_v20 = vpack.c.bf16 %v684_v18, %v682_v14  ;;  %v1047_v21 = vpack.c.bf16 %v694_v19, %v692_v15 }
 0x1de   : > { %1069 = vst [vmem:[%s1758_s8 + $0x8] sm:$0xff] %v1037_v20  }
 0x1df   : > { %1071 = vst [vmem:[%s1758_s8 + $0x18] sm:$0xff] %v1047_v21  }
 0x1e2   : > { %v704_v22 = vpop.f32.mrf.mxu2  ;;  %v714_v23 = vpop.f32.mrf.mxu3 }
 0x1e3   : > { %v1057_v24 = vpack.c.bf16 %v704_v22, %v702_v16  ;;  %v1067_v25 = vpack.c.bf16 %v714_v23, %v712_v17 }
 0x1e5   : > { %1073 = vst [vmem:[%s1758_s8 + $0x28] sm:$0xff] %v1057_v24  }
 0x1e6   : > { %1075 = vst [vmem:[%s1758_s8 + $0x38] sm:$0xff] %v1067_v25  }
 0x1e7 PF: > { %s1922_s10 = sld [smem:[#allocation17_spill]]  ;;  %s762_s4 = sshll.u32 %s1758_s8, 4  ;;  %s763_s4 = int_to_ptr.vmem [resolvable:$true] %s762_s4 }
 0x1e8   : > { %s1924_s3 = sld [smem:[#allocation28_spill]]  ;;  %s750_s30 = scalar_lea.sflag [#allocation5], %s289_s6 }
 0x1ed   : > { %s1028_s2 = sshll.u32 %s1922_s10, 6 }
 0x1ee   : > { %s761_s18 = scalar_lea.hbm %s1924_s3, %s1028_s2  ;;  %s1384_s17 = scalar_lea.hbm %s1924_s3, 192 }
 0x1ef   : > { %s764_s14 = sshll.u32 %s761_s18, 4  ;;  %s765_s14 = int_to_ptr.hbm [resolvable:$true] %s764_s14 }
 0x1f0   : > { %s1378_s9 = sshra.s32 %s765_s14, 4  ;;  %s1379_s9 = int_to_ptr.hbm [resolvable:$true] %s1378_s9 }
 0x1f1   : > { %s1380_s5 = scalar_lea.hbm %s1379_s9, 64  ;;  %p1385_p10 = scmp.lt.s32.totalorder %s1379_s9, %s1924_s3 }
 0x1f2   : > { %p1381_p5 = scmp.ne.s32.totalorder %s1379_s9, %s1380_s5  ;;  %p1386_p0 = scmp.lt.s32.totalorder %s1384_s17, %s1380_s5 }
 0x1f4   : > { %p1382_p13 = pnand %p1381_p5, %p1643_p9  ;;  %p1387_p4 = por %p1386_p0, %p1385_p10 }
 0x1f6   : > { %p1383_p7 = pneg %p1382_p13 }
 0x1f8   : > { %p1388_p6 = pnand %p1387_p4, %p1383_p7 }
 0x1fa   : > { %1391 = shalt.err (!%p1388_p6)
}
 0x1fb   : > { %s1525_s6 = smov 64   ;;  %s1526_s21 = smov 4  }
 0x1fc   : > { %1133 = dma.vmem_to_hbm [thread:$0]  (%p1643_p9), %s763_s4, 1024, %s765_s14, %s750_s30, %s1525_s6, %s1525_s6, %s1526_s21  }
 0x1fd PF: > { %s1925_s8 = sld [smem:[#allocation14_spill]]  ;;  %p1153_p8 = scmp.ge.s32.totalorder %s1518_s28, 2 }
 0x1ff   : > { %p1147_p2 = pnand %p1153_p8, %p1648_p11 }
 0x201   : > { %p1148_p12 = pneg %p1147_p2 }
 0x203   : > { %s779_s29 = sand.u32 1, %s1925_s8  }
 0x204   : > { %s780_s7 = scalar_lea.sflag [#allocation5], %s779_s29 }
 0x205   : > { %1461 = dma.done.wait (%p1148_p12), %s780_s7, 1024  }
 0x206   : > { %1463 = vsyncadd (%p1148_p12), %s780_s7, 4294966272  ;;  %s23_s28 = sadd.s32 1, %s1518_s28   ;;  %s1928_s25 = sld [smem:[#allocation15_spill]] }
 0x207   : > { %p1829_p3 = scmp.ge.s32.totalorder %s23_s28, 11   ;;  %s1929_s17 = sld [smem:[#allocation23_spill]] }
 0x208   : > { %s1930_s2 = sld [smem:[#allocation16_spill]]  ;;  %s1935_s15 = smov %s1470_s16 }
 0x209   : > { %s1931_s23 = sld [smem:[#allocation24_spill]]  ;;  %s1937_s18 = smov %s1482_s19 }
 0x20a   : > { %s1932_s27 = sld [smem:[#allocation18_spill]]  ;;  %s1938_s19 = smov %s1486_s20 }
 0x20b   : > { %s1933_s12 = sld [smem:[#allocation21_spill]]  ;;  %s1939_s20 = smov %s1720_s11 }
 0x20c   : > { %s1934_s4 = sld [smem:[#allocation22_spill]]  ;;  %s1936_s16 = smov %s1928_s25 }
 0x20d   : > { %s1940_s21 = smov %s1494_s22  ;;  %s1942_s24 = smov %s1510_s26 }
 0x20e   : > { %s1941_s22 = smov %s1930_s2  ;;  %22 = sbr.rel (!%p1829_p3) target bundleno = 17 (0x11), region = 106 }
 0x210   : > { %s1943_s25 = smov %s1932_s27 }
 0x211   : > { %s1944_s26 = smov %s1933_s12 }
 0x212   : > { %s1945_s27 = smov %s1934_s4 }
 0x213   :  { %786 = vsyncpa [#allocation4], 1 }
 0x214   :  { %788 = vsyncpa [#allocation4 + $0x1], 1 }
 0x215   :  { %789 = vsyncpa [#allocation7], 1 }
 0x216   :  { %791 = vsyncpa [#allocation7 + $0x1], 1 }
 0x217   :  { %792 = vsyncpa [#allocation5], 1 }
 0x218   :  { %794 = vsyncpa [#allocation5 + $0x1], 1 }

</bundles_post_ra>
